<compile_context>
chip_gen: v7x
topology: tpu7x:2x2x1
jax: 0.10.0
libtpu: 0.0.40
codegen_flags: <defaults>
</compile_context>

<pallas_src>
import jax
import jax.numpy as jnp
from jax.experimental import pallas as pl
from jax.experimental.pallas import tpu as pltpu

HIDDEN = 32          # hidden_size
VOCAB = 64           # synthetic stand-in for output_size = len(char_to_index)
MAX_LENGTH = 70      # max_length from the module
L_PAD = 128          # MAX_LENGTH padded to one full lane dimension
NEG_INF = -1e30

# slab column layout (every block starts on a 128-lane boundary)
_EMB_OFF = 0         # embedding table: rows 0:V (=2H), cols 0:H
_ATTN_OFF = 128      # attention Linear (2H -> L), L padded to 128 cols
_COMB_OFF = 256      # attn_combine "embedded half" Wc_emb: rows 0:H, cols 0:H
_GRU_OFF = 384       # fused GRU weight (2H -> 4H), exactly 128 cols
_OUT_OFF = 512       # out Linear (H -> V): rows 0:H, padded to 128 cols
_SLAB_W = 640
_BIAS_ROW = 2 * HIDDEN          # = 64 : all biases live in this row
_SLAB_ROWS = _BIAS_ROW + 8      # = 72 (sublane-aligned)

# packed per-step output layout: [logp(64) | h_new(32) | pad(32) | attn_w(128)]
_OUT_LANES = 256
_O_LOGP = 0
_O_HID = VOCAB
_O_ATTN = 128


def _attn_decoder_kernel(tok_ref, hid0_ref, encp_ref, slab_ref, out_ref, cat_sc):
    """One decode step per grid iteration; hidden carried in cat_sc[:, H:2H]."""
    H = HIDDEN
    t = pl.program_id(0)

    @pl.when(t == 0)
    def _():
        cat_sc[:, H:2 * H] = hid0_ref[...]          # load initial hidden once

    # embedding lookup: dynamic-row load from the slab's embedding column block
    # TODO(synk): no bounds check — an out-of-range token reads adjacent VMEM.
    idx = tok_ref[t]
    emb_row = slab_ref[pl.ds(idx, 1), :]                         # (1, 640)
    embedded = emb_row[:, _EMB_OFF:_EMB_OFF + H]                 # (1, H)

    cat_sc[:, 0:H] = embedded                                    # [emb | hidden]
    hidden = cat_sc[:, H:2 * H]                                  # (1, H) value

    # fused dot: [emb|hidden] @ [W_attn(128) | Wc_emb(128)]  -> (1, 256)
    g1 = (jnp.dot(cat_sc[...],
                  slab_ref[0:2 * H, _ATTN_OFF:_ATTN_OFF + 256],
                  preferred_element_type=jnp.float32)
          + slab_ref[_BIAS_ROW:_BIAS_ROW + 1, _ATTN_OFF:_ATTN_OFF + 256])

    # attn_weights = softmax over the first 128 lanes (pad bias -1e30 -> 0)
    a_logits = g1[:, 0:L_PAD]
    m = jnp.max(a_logits, axis=1, keepdims=True)
    e = jnp.exp(a_logits - m)
    attn_w = e / jnp.sum(e, axis=1, keepdims=True)               # exact norm

    # combine = emb@Wc_emb + attn_w @ (enc_pad @ Wc_app) + b_c ; then ReLU
    comb = g1[:, L_PAD:L_PAD + H] + jnp.dot(attn_w, encp_ref[...],
                                            preferred_element_type=jnp.float32)
    x = jnp.maximum(comb, 0.0)                                   # (1, H)
    cat_sc[:, 0:H] = x                                           # [x | hidden]

    # fused single-step GRU (PyTorch gate order r,z,n):
    # [x|hidden] @ Wg -> [i_r+h_r, i_z+h_z, i_n, h_n] in one (1,64)@(64,128) dot
    g2 = (jnp.dot(cat_sc[...],
                  slab_ref[0:2 * H, _GRU_OFF:_GRU_OFF + 128],
                  preferred_element_type=jnp.float32)
          + slab_ref[_BIAS_ROW:_BIAS_ROW + 1, _GRU_OFF:_GRU_OFF + 128])
    r = jax.nn.sigmoid(g2[:, 0:H])
    z = jax.nn.sigmoid(g2[:, H:2 * H])
    n = jnp.tanh(g2[:, 2 * H:3 * H] + r * g2[:, 3 * H:4 * H])
    h_new = (1.0 - z) * n + z * hidden                           # (1, H)
    cat_sc[:, H:2 * H] = h_new                                   # carry to next step

    # out projection + log_softmax (weight rows 0:H only; cols padded to 128)
    logits_p = (jnp.dot(h_new, slab_ref[0:H, _OUT_OFF:_OUT_OFF + 128],
                        preferred_element_type=jnp.float32)
                + slab_ref[_BIAS_ROW:_BIAS_ROW + 1, _OUT_OFF:_OUT_OFF + 128])
    logits = logits_p[:, 0:VOCAB]
    lm = jnp.max(logits, axis=1, keepdims=True)
    lse = jnp.log(jnp.sum(jnp.exp(logits - lm), axis=1, keepdims=True)) + lm
    logp = logits - lse

    # single lane-dense packed store (1, 256)
    out_ref[...] = jnp.concatenate(
        [logp, h_new, jnp.zeros((1, H), jnp.float32), attn_w], axis=1)


def pack_params(params):
    """Pack weights, biases AND embedding into ONE (72, 640) f32 slab.

    Do this ONCE per model (hoisted out of the decode loop)."""
    H, V, L = HIDDEN, VOCAB, MAX_LENGTH
    S = jnp.zeros((_SLAB_ROWS, _SLAB_W), jnp.float32)

    # embedding table (V = 64 = 2H rows fit in the slab's weight rows)
    S = S.at[0:V, _EMB_OFF:_EMB_OFF + H].set(params["embedding"])

    # attention Linear (2H -> L); bias pad lanes get -1e30 so softmax ignores them
    S = S.at[0:2 * H, _ATTN_OFF:_ATTN_OFF + L].set(params["attn_w"].T)
    S = S.at[_BIAS_ROW, _ATTN_OFF:_ATTN_OFF + L].set(params["attn_b"])
    S = S.at[_BIAS_ROW, _ATTN_OFF + L:_ATTN_OFF + L_PAD].set(NEG_INF)

    # attn_combine "embedded half" (rows 0:H); the attn_applied half is folded
    # into the encoder projection (prepare_encoder) via associativity.
    S = S.at[0:H, _COMB_OFF:_COMB_OFF + H].set(params["comb_w"][:, 0:H].T)
    S = S.at[_BIAS_ROW, _COMB_OFF:_COMB_OFF + H].set(params["comb_b"])

    # fused GRU block weight (pre-transposed to (in, out)):
    #   [[W_ih_r, W_ih_z, W_ih_n,   0   ],
    #    [W_hh_r, W_hh_z,   0   , W_hh_n]]
    w_ih_t = params["w_ih"].T                     # (H, 3H), cols ordered r,z,n
    w_hh_t = params["w_hh"].T                     # (H, 3H)
    S = S.at[0:H, _GRU_OFF:_GRU_OFF + 3 * H].set(w_ih_t)
    S = S.at[H:2 * H, _GRU_OFF:_GRU_OFF + 2 * H].set(w_hh_t[:, 0:2 * H])
    S = S.at[H:2 * H, _GRU_OFF + 3 * H:_GRU_OFF + 4 * H].set(w_hh_t[:, 2 * H:3 * H])
    b_ih, b_hh = params["b_ih"], params["b_hh"]
    b_gru = jnp.concatenate(
        [b_ih[0:2 * H] + b_hh[0:2 * H], b_ih[2 * H:3 * H], b_hh[2 * H:3 * H]])
    S = S.at[_BIAS_ROW, _GRU_OFF:_GRU_OFF + 4 * H].set(b_gru)

    # out Linear (H -> V)
    S = S.at[0:H, _OUT_OFF:_OUT_OFF + V].set(params["out_w"].T)
    S = S.at[_BIAS_ROW, _OUT_OFF:_OUT_OFF + V].set(params["out_b"])
    return S


def prepare_encoder(encoder_outputs, params):
    """Pad encoder outputs to 128 rows and pre-project through the attn_applied
    half of attn_combine:  enc_proj = enc_pad @ Wc_app.  Once per sequence."""
    enc_pad = jnp.zeros((L_PAD, HIDDEN), jnp.float32).at[:MAX_LENGTH, :].set(
        encoder_outputs.astype(jnp.float32))
    w_app = params["comb_w"][:, HIDDEN:].astype(jnp.float32)    # (H, H)
    return enc_pad @ w_app.T                                    # (L_PAD, H)


@jax.jit
def attn_decoder_decode(tokens, hidden0, enc_proj, slab):
    """Run T decode steps inside ONE pallas_call (teacher-forced tokens).

    tokens: int32 (T,), hidden0: (1, H), enc_proj: (L_PAD, H), slab: (72, 640).
    Returns logp (T, V), hidden per step (T, H), attn weights (T, MAX_LENGTH)."""
    T = tokens.shape[0]
    const2 = lambda t, toks: (0, 0)          # constant block index -> VMEM-resident
    packed = pl.pallas_call(
        _attn_decoder_kernel,
        out_shape=jax.ShapeDtypeStruct((T, 1, _OUT_LANES), jnp.float32),
        grid_spec=pltpu.PrefetchScalarGridSpec(
            num_scalar_prefetch=1,                 # tokens -> SMEM
            grid=(T,),
            in_specs=[
                pl.BlockSpec((1, HIDDEN), const2),           # hidden0
                pl.BlockSpec((L_PAD, HIDDEN), const2),       # enc_proj
                pl.BlockSpec((_SLAB_ROWS, _SLAB_W), const2), # weight slab
            ],
            out_specs=pl.BlockSpec((None, 1, _OUT_LANES),
                                   lambda t, toks: (t, 0, 0)),
            scratch_shapes=[pltpu.VMEM((1, 2 * HIDDEN), jnp.float32)],
        ),
        compiler_params=pltpu.CompilerParams(
            dimension_semantics=("arbitrary",)),   # sequential: hidden carry
    )(tokens.astype(jnp.int32),
      hidden0.astype(jnp.float32),
      enc_proj.astype(jnp.float32),
      slab)
    packed = packed[:, 0, :]
    logp = packed[:, _O_LOGP:_O_LOGP + VOCAB]
    h_all = packed[:, _O_HID:_O_HID + HIDDEN]
    attn_w = packed[:, _O_ATTN:_O_ATTN + MAX_LENGTH]
    return logp, h_all, attn_w


def attn_decoder_forward(input_idx, hidden, encoder_outputs, params, slab=None):
    """Single decode step with the original module interface (T=1)."""
    if slab is None:
        slab = pack_params(params)
    enc_proj = prepare_encoder(encoder_outputs, params)
    tokens = jnp.asarray(input_idx, jnp.int32).reshape((1,))
    logp, h_all, attn_w = attn_decoder_decode(
        tokens, hidden.reshape(1, HIDDEN).astype(jnp.float32), enc_proj, slab)
    return logp, h_all.reshape(1, 1, HIDDEN), attn_w


def reference_forward(input_idx, hidden, encoder_outputs, p):
    """Pure-JAX reference mirroring the PyTorch forward (eval mode)."""
    H = HIDDEN
    emb = p["embedding"][input_idx[0]][None, :]
    h0 = hidden.reshape(1, H)
    cat = jnp.concatenate([emb, h0], axis=1)
    aw = jax.nn.softmax(cat @ p["attn_w"].T + p["attn_b"], axis=1)
    applied = aw @ encoder_outputs
    x = jnp.concatenate([emb, applied], axis=1) @ p["comb_w"].T + p["comb_b"]
    x = jnp.maximum(x, 0.0)
    gi = x @ p["w_ih"].T + p["b_ih"]
    gh = h0 @ p["w_hh"].T + p["b_hh"]
    i_r, i_z, i_n = gi[:, :H], gi[:, H:2 * H], gi[:, 2 * H:]
    h_r, h_z, h_n = gh[:, :H], gh[:, H:2 * H], gh[:, 2 * H:]
    r = jax.nn.sigmoid(i_r + h_r)
    z = jax.nn.sigmoid(i_z + h_z)
    n = jnp.tanh(i_n + r * h_n)
    h_new = (1.0 - z) * n + z * h0
    logp = jax.nn.log_softmax(h_new @ p["out_w"].T + p["out_b"], axis=1)
    return logp, h_new.reshape(1, 1, H), aw


def init_params(key):
    H, V, L = HIDDEN, VOCAB, MAX_LENGTH
    ks = jax.random.split(key, 10)
    s = 0.1
    return {
        "embedding": s * jax.random.normal(ks[0], (V, H), jnp.float32),
        "attn_w":    s * jax.random.normal(ks[1], (L, 2 * H), jnp.float32),
        "attn_b":    s * jax.random.normal(ks[2], (L,), jnp.float32),
        "comb_w":    s * jax.random.normal(ks[3], (H, 2 * H), jnp.float32),
        "comb_b":    s * jax.random.normal(ks[4], (H,), jnp.float32),
        "w_ih":      s * jax.random.normal(ks[5], (3 * H, H), jnp.float32),
        "w_hh":      s * jax.random.normal(ks[6], (3 * H, H), jnp.float32),
        "b_ih":      s * jax.random.normal(ks[7], (3 * H,), jnp.float32),
        "b_hh":      s * jax.random.normal(ks[8], (3 * H,), jnp.float32),
        "out_w":     s * jax.random.normal(ks[9], (V, H), jnp.float32),
        "out_b":     jnp.zeros((V,), jnp.float32),
    }


if __name__ == "__main__":
    key = jax.random.PRNGKey(0)
    pkey, hkey, ekey, tkey = jax.random.split(key, 4)
    params = init_params(pkey)

    slab = pack_params(params)                      # hoisted: packed ONCE
    hidden0 = 0.1 * jax.random.normal(hkey, (1, 1, HIDDEN), jnp.float32)
    encoder_outputs = 0.1 * jax.random.normal(ekey, (MAX_LENGTH, HIDDEN),
                                              jnp.float32)
    enc_proj = prepare_encoder(encoder_outputs, params)   # once per sequence

    T = 6
    tokens = jax.random.randint(tkey, (T,), 0, VOCAB, dtype=jnp.int32)

    # multi-step decode loop inside ONE pallas_call
    logp, h_all, attn_w = attn_decoder_decode(tokens, hidden0.reshape(1, HIDDEN),
                                              enc_proj, slab)
    jax.block_until_ready((logp, h_all, attn_w))

    # pure-JAX reference: loop the single-step forward, carrying hidden
    h = hidden0
    ref_lp, ref_h, ref_aw = [], [], []
    for t in range(T):
        lp, h, aw = reference_forward(tokens[t:t + 1], h, encoder_outputs, params)
        ref_lp.append(lp)
        ref_h.append(h.reshape(1, HIDDEN))
        ref_aw.append(aw)
    ref_lp = jnp.concatenate(ref_lp, axis=0)
    ref_h = jnp.concatenate(ref_h, axis=0)
    ref_aw = jnp.concatenate(ref_aw, axis=0)

    assert logp.shape == (T, VOCAB)
    assert h_all.shape == (T, HIDDEN)
    assert attn_w.shape == (T, MAX_LENGTH)
    assert jnp.allclose(logp, ref_lp, atol=1e-3, rtol=1e-3), "log-probs mismatch"
    assert jnp.allclose(h_all, ref_h, atol=1e-3, rtol=1e-3), "hidden mismatch"
    assert jnp.allclose(attn_w, ref_aw, atol=1e-3, rtol=1e-3), "attn weights mismatch"

    # module-style single-step interface (same kernel, T=1)
    slogp, sh, saw = attn_decoder_forward(tokens[0:1], hidden0, encoder_outputs,
                                          params, slab=slab)
    jax.block_until_ready((slogp, sh, saw))
    assert slogp.shape == (1, VOCAB)
    assert sh.shape == (1, 1, HIDDEN)
    assert saw.shape == (1, MAX_LENGTH)
    assert jnp.allclose(slogp, ref_lp[0:1], atol=1e-3, rtol=1e-3)
    assert jnp.allclose(sh.reshape(1, HIDDEN), ref_h[0:1], atol=1e-3, rtol=1e-3)

    print("KERNEL_OK")
</pallas_src>

<mosaic_0001>
module attributes {stable_mosaic.version = 11 : i64} {
  func.func @_attn_decoder_kernel(%arg0: i32, %arg1: memref<6xi32, #tpu.memory_space<smem>>, %arg2: memref<1x32xf32, #tpu.memory_space<vmem>>, %arg3: memref<128x32xf32, #tpu.memory_space<vmem>>, %arg4: memref<72x640xf32, #tpu.memory_space<vmem>>, %arg5: memref<1x1x256xf32, #tpu.memory_space<vmem>>, %arg6: memref<1x64xf32, #tpu.memory_space<vmem>>) attributes {dimension_semantics = [#tpu.dimension_semantics<arbitrary>], iteration_bounds = array<i64: 6>, scalar_prefetch = 1 : i64, scratch_operands = 1 : i64, tpu.core_type = #tpu.core_type<tc>, window_params = [{pipeline_mode = #tpu.pipeline_mode<synchronous>, transform_indices = @transform_0, window_bounds = array<i64: 1, 32>}, {pipeline_mode = #tpu.pipeline_mode<synchronous>, transform_indices = @transform_1, window_bounds = array<i64: 128, 32>}, {pipeline_mode = #tpu.pipeline_mode<synchronous>, transform_indices = @transform_2, window_bounds = array<i64: 72, 640>}, {transform_indices = @transform_3, window_bounds = array<i64: 1, 1, 256>}]} {
    %c0_i32 = arith.constant 0 : i32
    %0 = arith.cmpi eq, %arg0, %c0_i32 : i32
    %1 = arith.extui %0 : i1 to i32
    %c0_i32_0 = arith.constant 0 : i32
    %2 = arith.cmpi ne, %1, %c0_i32_0 : i32
    scf.if %2 {
      %c0_37 = arith.constant 0 : index
      %c0_38 = arith.constant 0 : index
      %81 = vector.load %arg2[%c0_37, %c0_38] : memref<1x32xf32, #tpu.memory_space<vmem>>, vector<1x32xf32>
      %c0_39 = arith.constant 0 : index
      %c32_40 = arith.constant 32 : index
      %82 = vector.load %arg6[%c0_39, %c32_40] : memref<1x64xf32, #tpu.memory_space<vmem>>, vector<1x32xf32>
      tpu.vector_store %arg6[%c0_39, %c32_40], %81 {strides = array<i32>} : memref<1x64xf32, #tpu.memory_space<vmem>>, vector<1x32xf32>,
    } else {
    }
    %3 = arith.index_cast %arg0 : i32 to index
    %4 = memref.load %arg1[%3] : memref<6xi32, #tpu.memory_space<smem>>
    %5 = arith.index_cast %4 : i32 to index
    %c0 = arith.constant 0 : index
    %6 = vector.load %arg4[%5, %c0] : memref<72x640xf32, #tpu.memory_space<vmem>>, vector<1x640xf32>
    %7 = vector.extract_strided_slice %6 {offsets = [0, 0], sizes = [1, 32], strides = [1, 1]} : vector<1x640xf32> to vector<1x32xf32>
    %c0_1 = arith.constant 0 : index
    %c0_2 = arith.constant 0 : index
    %8 = vector.load %arg6[%c0_1, %c0_2] : memref<1x64xf32, #tpu.memory_space<vmem>>, vector<1x32xf32>
    tpu.vector_store %arg6[%c0_1, %c0_2], %7 {strides = array<i32>} : memref<1x64xf32, #tpu.memory_space<vmem>>, vector<1x32xf32>,
    %c0_3 = arith.constant 0 : index
    %c32 = arith.constant 32 : index
    %9 = vector.load %arg6[%c0_3, %c32] : memref<1x64xf32, #tpu.memory_space<vmem>>, vector<1x32xf32>
    %c0_4 = arith.constant 0 : index
    %c0_5 = arith.constant 0 : index
    %10 = vector.load %arg6[%c0_4, %c0_5] : memref<1x64xf32, #tpu.memory_space<vmem>>, vector<1x64xf32>
    %c0_6 = arith.constant 0 : index
    %c128 = arith.constant 128 : index
    %11 = vector.load %arg4[%c0_6, %c128] : memref<72x640xf32, #tpu.memory_space<vmem>>, vector<64x256xf32>
    %cst = arith.constant dense<0.000000e+00> : vector<1x256xf32>
    %12 = tpu.matmul %10, %11, %cst {dimension_numbers = #tpu.dot_dimension_numbers<[1], [0], [0], [1], [0, 0, 1, 1], [], []>} : vector<1x64xf32>, vector<64x256xf32>, vector<1x256xf32> -> vector<1x256xf32>
    %c64 = arith.constant 64 : index
    %c128_7 = arith.constant 128 : index
    %13 = vector.load %arg4[%c64, %c128_7] : memref<72x640xf32, #tpu.memory_space<vmem>>, vector<1x256xf32>
    %14 = arith.addf %12, %13 : vector<1x256xf32>
    %15 = vector.extract_strided_slice %14 {offsets = [0, 0], sizes = [1, 128], strides = [1, 1]} : vector<1x256xf32> to vector<1x128xf32>
    %cst_8 = arith.constant dense<0xFF800000> : vector<1xf32>
    %16 = vector.multi_reduction <maximumf>, %15, %cst_8 [1] : vector<1x128xf32> to vector<1xf32>
    %17 = vector.shape_cast %16 : vector<1xf32> to vector<1x1xf32>
    %18 = vector.broadcast %17 : vector<1x1xf32> to vector<1x128xf32>
    %19 = arith.subf %15, %18 : vector<1x128xf32>
    %20 = math.exp %19 : vector<1x128xf32>
    %cst_9 = arith.constant dense<0.000000e+00> : vector<1xf32>
    %21 = vector.multi_reduction <add>, %20, %cst_9 [1] : vector<1x128xf32> to vector<1xf32>
    %22 = vector.shape_cast %21 : vector<1xf32> to vector<1x1xf32>
    %23 = vector.broadcast %22 : vector<1x1xf32> to vector<1x128xf32>
    %24 = arith.divf %20, %23 : vector<1x128xf32>
    %25 = vector.extract_strided_slice %14 {offsets = [0, 128], sizes = [1, 32], strides = [1, 1]} : vector<1x256xf32> to vector<1x32xf32>
    %c0_10 = arith.constant 0 : index
    %c0_11 = arith.constant 0 : index
    %26 = vector.load %arg3[%c0_10, %c0_11] : memref<128x32xf32, #tpu.memory_space<vmem>>, vector<128x32xf32>
    %cst_12 = arith.constant dense<0.000000e+00> : vector<1x32xf32>
    %27 = tpu.matmul %24, %26, %cst_12 {dimension_numbers = #tpu.dot_dimension_numbers<[1], [0], [0], [1], [0, 0, 1, 1], [], []>} : vector<1x128xf32>, vector<128x32xf32>, vector<1x32xf32> -> vector<1x32xf32>
    %28 = arith.addf %25, %27 : vector<1x32xf32>
    %cst_13 = arith.constant 0.000000e+00 : f32
    %29 = vector.broadcast %cst_13 : f32 to vector<1x32xf32>
    %30 = arith.maximumf %28, %29 : vector<1x32xf32>
    %c0_14 = arith.constant 0 : index
    %c0_15 = arith.constant 0 : index
    %31 = vector.load %arg6[%c0_14, %c0_15] : memref<1x64xf32, #tpu.memory_space<vmem>>, vector<1x32xf32>
    tpu.vector_store %arg6[%c0_14, %c0_15], %30 {strides = array<i32>} : memref<1x64xf32, #tpu.memory_space<vmem>>, vector<1x32xf32>,
    %c0_16 = arith.constant 0 : index
    %c0_17 = arith.constant 0 : index
    %32 = vector.load %arg6[%c0_16, %c0_17] : memref<1x64xf32, #tpu.memory_space<vmem>>, vector<1x64xf32>
    %c0_18 = arith.constant 0 : index
    %c384 = arith.constant 384 : index
    %33 = vector.load %arg4[%c0_18, %c384] : memref<72x640xf32, #tpu.memory_space<vmem>>, vector<64x128xf32>
    %cst_19 = arith.constant dense<0.000000e+00> : vector<1x128xf32>
    %34 = tpu.matmul %32, %33, %cst_19 {dimension_numbers = #tpu.dot_dimension_numbers<[1], [0], [0], [1], [0, 0, 1, 1], [], []>} : vector<1x64xf32>, vector<64x128xf32>, vector<1x128xf32> -> vector<1x128xf32>
    %c64_20 = arith.constant 64 : index
    %c384_21 = arith.constant 384 : index
    %35 = vector.load %arg4[%c64_20, %c384_21] : memref<72x640xf32, #tpu.memory_space<vmem>>, vector<1x128xf32>
    %36 = arith.addf %34, %35 : vector<1x128xf32>
    %37 = vector.extract_strided_slice %36 {offsets = [0, 0], sizes = [1, 32], strides = [1, 1]} : vector<1x128xf32> to vector<1x32xf32>
    %38 = arith.negf %37 : vector<1x32xf32>
    %39 = math.exp %38 : vector<1x32xf32>
    %cst_22 = arith.constant 1.000000e+00 : f32
    %40 = vector.broadcast %cst_22 : f32 to vector<1x32xf32>
    %41 = arith.addf %40, %39 : vector<1x32xf32>
    %42 = arith.divf %40, %41 : vector<1x32xf32>
    %43 = vector.extract_strided_slice %36 {offsets = [0, 32], sizes = [1, 32], strides = [1, 1]} : vector<1x128xf32> to vector<1x32xf32>
    %44 = arith.negf %43 : vector<1x32xf32>
    %45 = math.exp %44 : vector<1x32xf32>
    %cst_23 = arith.constant 1.000000e+00 : f32
    %46 = vector.broadcast %cst_23 : f32 to vector<1x32xf32>
    %47 = arith.addf %46, %45 : vector<1x32xf32>
    %48 = arith.divf %46, %47 : vector<1x32xf32>
    %49 = vector.extract_strided_slice %36 {offsets = [0, 64], sizes = [1, 32], strides = [1, 1]} : vector<1x128xf32> to vector<1x32xf32>
    %50 = vector.extract_strided_slice %36 {offsets = [0, 96], sizes = [1, 32], strides = [1, 1]} : vector<1x128xf32> to vector<1x32xf32>
    %51 = arith.mulf %42, %50 : vector<1x32xf32>
    %52 = arith.addf %49, %51 : vector<1x32xf32>
    %53 = math.tanh %52 : vector<1x32xf32>
    %cst_24 = arith.constant 1.000000e+00 : f32
    %54 = vector.broadcast %cst_24 : f32 to vector<1x32xf32>
    %55 = arith.subf %54, %48 : vector<1x32xf32>
    %56 = arith.mulf %55, %53 : vector<1x32xf32>
    %57 = arith.mulf %48, %9 : vector<1x32xf32>
    %58 = arith.addf %56, %57 : vector<1x32xf32>
    %c0_25 = arith.constant 0 : index
    %c32_26 = arith.constant 32 : index
    %59 = vector.load %arg6[%c0_25, %c32_26] : memref<1x64xf32, #tpu.memory_space<vmem>>, vector<1x32xf32>
    tpu.vector_store %arg6[%c0_25, %c32_26], %58 {strides = array<i32>} : memref<1x64xf32, #tpu.memory_space<vmem>>, vector<1x32xf32>,
    %c0_27 = arith.constant 0 : index
    %c512 = arith.constant 512 : index
    %60 = vector.load %arg4[%c0_27, %c512] : memref<72x640xf32, #tpu.memory_space<vmem>>, vector<32x128xf32>
    %cst_28 = arith.constant dense<0.000000e+00> : vector<1x128xf32>
    %61 = tpu.matmul %58, %60, %cst_28 {dimension_numbers = #tpu.dot_dimension_numbers<[1], [0], [0], [1], [0, 0, 1, 1], [], []>} : vector<1x32xf32>, vector<32x128xf32>, vector<1x128xf32> -> vector<1x128xf32>
    %c64_29 = arith.constant 64 : index
    %c512_30 = arith.constant 512 : index
    %62 = vector.load %arg4[%c64_29, %c512_30] : memref<72x640xf32, #tpu.memory_space<vmem>>, vector<1x128xf32>
    %63 = arith.addf %61, %62 : vector<1x128xf32>
    %64 = vector.extract_strided_slice %63 {offsets = [0, 0], sizes = [1, 64], strides = [1, 1]} : vector<1x128xf32> to vector<1x64xf32>
    %cst_31 = arith.constant dense<0xFF800000> : vector<1xf32>
    %65 = vector.multi_reduction <maximumf>, %64, %cst_31 [1] : vector<1x64xf32> to vector<1xf32>
    %66 = vector.shape_cast %65 : vector<1xf32> to vector<1x1xf32>
    %67 = vector.broadcast %66 : vector<1x1xf32> to vector<1x64xf32>
    %68 = arith.subf %64, %67 : vector<1x64xf32>
    %69 = math.exp %68 : vector<1x64xf32>
    %cst_32 = arith.constant dense<0.000000e+00> : vector<1xf32>
    %70 = vector.multi_reduction <add>, %69, %cst_32 [1] : vector<1x64xf32> to vector<1xf32>
    %71 = vector.shape_cast %70 : vector<1xf32> to vector<1x1xf32>
    %72 = math.log %71 : vector<1x1xf32>
    %73 = arith.addf %72, %66 : vector<1x1xf32>
    %74 = vector.broadcast %73 : vector<1x1xf32> to vector<1x64xf32>
    %75 = arith.subf %64, %74 : vector<1x64xf32>
    %cst_33 = arith.constant 0.000000e+00 : f32
    %76 = vector.broadcast %cst_33 : f32 to vector<1x32xf32>
    %77 = tpu.concatenate %75, %58, %76, %24 in 1 : vector<1x64xf32>, vector<1x32xf32>, vector<1x32xf32>, vector<1x128xf32> -> vector<1x256xf32>
    %c0_34 = arith.constant 0 : index
    %c0_35 = arith.constant 0 : index
    %c0_36 = arith.constant 0 : index
    %78 = vector.load %arg5[%c0_34, %c0_35, %c0_36] : memref<1x1x256xf32, #tpu.memory_space<vmem>>, vector<1x1x256xf32>
    %79 = vector.shape_cast %78 : vector<1x1x256xf32> to vector<1x256xf32>
    %80 = vector.shape_cast %77 : vector<1x256xf32> to vector<1x1x256xf32>
    tpu.vector_store %arg5[%c0_34, %c0_35, %c0_36], %80 {strides = array<i32>} : memref<1x1x256xf32, #tpu.memory_space<vmem>>, vector<1x1x256xf32>,
    return
  }
  func.func @transform_0(%arg0: i32, %arg1: memref<6xi32, #tpu.memory_space<smem>>) -> (i32, i32) {
    %c0_i32 = arith.constant 0 : i32
    %c0_i32_0 = arith.constant 0 : i32
    %c0_i32_1 = arith.constant 0 : i32
    return %c0_i32, %c0_i32_0 : i32, i32
  }
  func.func @transform_1(%arg0: i32, %arg1: memref<6xi32, #tpu.memory_space<smem>>) -> (i32, i32) {
    %c0_i32 = arith.constant 0 : i32
    %c0_i32_0 = arith.constant 0 : i32
    %c0_i32_1 = arith.constant 0 : i32
    return %c0_i32, %c0_i32_0 : i32, i32
  }
  func.func @transform_2(%arg0: i32, %arg1: memref<6xi32, #tpu.memory_space<smem>>) -> (i32, i32) {
    %c0_i32 = arith.constant 0 : i32
    %c0_i32_0 = arith.constant 0 : i32
    %c0_i32_1 = arith.constant 0 : i32
    return %c0_i32, %c0_i32_0 : i32, i32
  }
  func.func @transform_3(%arg0: i32, %arg1: memref<6xi32, #tpu.memory_space<smem>>) -> (i32, i32, i32) {
    %c0_i32 = arith.constant 0 : i32
    %c0_i32_0 = arith.constant 0 : i32
    %c0_i32_1 = arith.constant 0 : i32
    return %arg0, %c0_i32, %c0_i32_0 : i32, i32, i32
  }
}

</mosaic_0001>

<bundles_post_ra>
// kernel: attn_decoder_decode.1
= control target key start
LH: loop header
LB: loop body
LE: loop exit
PB: predicated region body
PF: predicated region fallthrough
CT: control target
= control target key end

     0   :  { %s1171_s0 = inlined_call_operand.vmem [shape: s32[6], index: 0, kind: input, shape index: {}]   ;;  %s1172_s1 = inlined_call_operand.vmem [shape: f32[1,32], index: 1, kind: input, shape index: {}]   ;;  %s1173_s2 = inlined_call_operand.vmem [shape: f32[128,32], index: 2, kind: input, shape index: {}]   ;;  %s1174_s3 = inlined_call_operand.hbm [shape: f32[72,640], index: 3, kind: input, shape index: {}]   ;;  %s1175_s4 = inlined_call_operand.vmem [shape: f32[6,1,256], index: 4, kind: output, shape index: {}]  }
   0x1   :  { %s9_s17 = sshll.u32 %s1171_s0, 4  ;;  %s10_s17 = int_to_ptr.vmem [resolvable:$true] %s9_s17 }
   0x2   :  { %s910_s18 = scalar_lea.vmem %s10_s17, 16  ;;  %p915_p1 = scmp.lt.s32.totalorder %s10_s17, %s10_s17 }
   0x3   :  { %p911_p0 = scmp.ne.s32.totalorder %s10_s17, %s910_s18  ;;  %p916_p2 = scmp.lt.s32.totalorder %s910_s18, %s910_s18 }
   0x5   :  { %p917_p3 = por %p916_p2, %p915_p1 }
   0x7   :  { %p918_p4 = pnand %p917_p3, %p911_p0 }
   0x9   :  { %921 = shalt.err (!%p918_p4)  }
   0xa   :  { %s964_s19 = smov [#allocation4]  }
   0xb   :  { %12 = dma.vmem_to_smem %s10_s17, 16, %s964_s19, [#allocation3] }
   0xc   :  { %954 = dma.done.wait [#allocation3], 16 }
   0xd   :  { %955 = vsyncadd [#allocation3], 4294967280 }
   0xe   :  { %14 = sfence }
   0xf   :  { %15 = vsyncpa [#allocation6], 0  ;;  %s1004_s20 = smov 0  }
  0x10 LB: > { %s1010_s0 = sadd.s32 4294967295, %s962_s20   ;;  %p698_p5 = scmp.ge.s32.totalorder %s962_s20, 1  ;;  %s962_s20 = sphi %s1004_s20, %s21_s20  }
  0x11   : > { %p115_p6 = scmp.lt.s32.totalorder %s962_s20, 7  ;;  %s965_s21 = smov [#allocation5]  }
  0x12   : > { %s133_s22 = sshll.u32 %s965_s21, 4  ;;  %p1176_p9 = scmp.eq.s32.totalorder %s1010_s0, 0  ;;  %s134_s22 = int_to_ptr.vmem [resolvable:$true] %s133_s22 }
  0x13   : > { %p1015_p8 = pnand %p698_p5, %p115_p6  ;;  %s922_s27 = scalar_lea.hbm %s1174_s3, 5760 }
  0x14   : > { %p923_p12 = scmp.ne.s32.totalorder %s1174_s3, %s922_s27  ;;  %p929_p2 = scmp.lt.u32.totalorder %s922_s27, %s1174_s3 }
  0x15   : > { %s1178_s23 = scalar_select %p1015_p8, 1, 0 }
  0x16   : > { %p870_p10 = pneg %p1015_p8 }
  0x18   : > { %p1024_p11 = pnand %p1176_p9, %p870_p10 }
  0x1a   : > { %p924_p13 = pneg %p1024_p11 }
  0x1c   : > { %p925_p0 = pnand %p924_p13, %p923_p12 }
  0x1e   : > { %p926_p1 = pneg %p925_p0 }
  0x20   : > { %p931_p3 = pnand %p929_p2, %p926_p1 }
  0x22   : > { %934 = shalt.err (!%p931_p3)
}
  0x23   : > { %s935_s6 = scalar_lea.vmem %s134_s22, 5760  ;;  %p943_p10 = scmp.lt.s32.totalorder %s134_s22, %s134_s22 }
  0x24   : > { %p936_p4 = scmp.ne.s32.totalorder %s134_s22, %s935_s6  ;;  %p944_p7 = scmp.lt.s32.totalorder %s935_s6, %s935_s6 }
  0x26   : > { %p938_p5 = pnand %p936_p4, %p924_p13  ;;  %p945_p9 = por %p944_p7, %p943_p10 }
  0x28   : > { %p939_p6 = pneg %p938_p5 }
  0x2a   : > { %p946_p8 = pnand %p945_p9, %p939_p6 }
  0x2c   : > { %949 = shalt.err (!%p946_p8)
}
  0x2d   : > { %s966_s7 = smov 640   ;;  %s967_s8 = smov 40  }
  0x2e   : > { %873 = dma.hbm_to_vmem [thread:$0]  (!%p1024_p11), %s1174_s3, 5760, %s134_s22, [#allocation6], %s966_s7, %s966_s7, %s967_s8  }
  0x2f   : > { %p1180_p12 = scmp.ne.s32.totalorder %s1178_s23, 0 }
  0x30   : > { %p1181_p0 = scmp.eq.s32.totalorder (!%p1180_p12), %s1010_s0, 0 }
  0x31   : > { %149 = sbr.rel (%p1180_p12) target bundleno = 2185 (0x889), region = 32 }
  0x38   : > { %957 = dma.done.wait (%p1181_p0), [#allocation6], 5760   ;;  %p1182_p13 = pmov %p1181_p0 }
  0x39   : > { %p167_p7 = scmp.lt.s32.totalorder %s1010_s0, 5  ;;  %p1183_p8 = scmp.ne.s32.totalorder %s1010_s0, 0 }
  0x3a   : > { %959 = vsyncadd (%p1182_p13), [#allocation6], 4294961536  ;;  %v704_v0 = vld [vmem:[%s1172_s1] ss:$0 sm:$0xff] (!%p1183_p8)  ;;  %s968_s18 = smov (!%p1183_p8), 32   ;;  %vm184_vm0 = vcmask (!%p1183_p8), 516352  }
  0x3b   : > { %s168_s11 = scalar_select %p167_p7, %s1010_s0, 5 }
  0x3c   : > { %174 = sbr.rel (%p1183_p8) target bundleno = 176 (0xb0), region = 40  ;;  %181 = vrot.lane.b32.xlu0 (!%p1183_p8), %v704_v0, %s968_s18 }
  0x3d   : > { %s702_s12 = sshll.u32 %s168_s11, 1 }
  0x3e   : > { %s1055_s15 = scalar_lea.vmem %s1175_s4, %s702_s12 }
  0xae   : > { %v182_v1 = vpop.permute.xlu0 %181 }
  0xaf   : > { %185 = vst.msk [vmem:[#allocation2] sm:$0x1] %vm184_vm0, %v182_v1 }
  0xb0 PF: > { %v202_v2 = vld [vmem:[#allocation5 + $0x10] sm:$0xff]  ;;  %v204_v3 = vld [vmem:[#allocation5 + $0x38] sm:$0xff]  ;;  %v201_v4 = vld [vmem:[#allocation5 + $0x8] sm:$0xff]  ;;  %s1063_s19 = sld [smem:[#allocation4 + %s1010_s0]]  ;;  %v969_v9 = vmov 0.0   ;;  %vm198_vm1 = vcmask 253952   ;;  %v220_v31 = vlaneseq }
  0xb1   : > { %v808_v5 = vpack.c.bf16 %v204_v3, %v202_v2  ;;  %v203_v6 = vld [vmem:[#allocation5 + $0x30] sm:$0xff]  ;;  %v206_v7 = vld [vmem:[#allocation5 + $0x60] sm:$0xff]  ;;  %v208_v8 = vld [vmem:[#allocation5 + $0x88] sm:$0xff]  ;;  %298 = vmatprep.mubr.f32.mxu0 %v969_v9  ;;  %vm230_vm2 = vcmask 523264   ;;  %vm305_vm3 = vcmask 1040384   ;;  %v970_v43 = vmov 0.0|0.0  }
  0xb2   : > { %v810_v10 = vpack.c.bf16 %v203_v6, %v201_v4  ;;  %v812_v11 = vpack.c.bf16 %v208_v8, %v206_v7  ;;  %v205_v12 = vld [vmem:[#allocation5 + $0x58] sm:$0xff]  ;;  %v207_v13 = vld [vmem:[#allocation5 + $0x80] sm:$0xff]  ;;  %v210_v14 = vld [vmem:[#allocation5 + $0xb0] sm:$0xff]  ;;  %v1074_v32 = vshrl.u32 %v220_v31, 7  ;;  %824 = vmatprep.subr.bf16.mxu1 %v970_v43  ;;  %vm971_vm4 = vmmov 0   ;;  %s972_s6 = smov 32  }
  0xb3   : > { %809 = vmatprep.subr.bf16.mxu0 %v808_v5  ;;  %v212_v15 = vld [vmem:[#allocation5 + $0xd8] sm:$0xff]  ;;  %v814_v16 = vpack.c.bf16 %v207_v13, %v205_v12  ;;  %v209_v18 = vld [vmem:[#allocation5 + $0xa8] sm:$0xff]  ;;  %v211_v19 = vld [vmem:[#allocation5 + $0xd0] sm:$0xff]  ;;  %775 = vmatprep.mubr.msk.f32.mxu1 %vm971_vm4, %v969_v9  ;;  %s973_s7 = smov 64   ;;  %s974_s8 = smov 96   ;;  %vm514_vm5 = vcmask 516352  }
  0xb4   : > { %811 = vmatpush1.bf16.msra.mxu0 %v810_v10  ;;  %v816_v17 = vpack.c.bf16 %v212_v15, %v210_v14  ;;  %v214_v20 = vld [vmem:[#allocation5 + $0x100] sm:$0xff]  ;;  %v216_v21 = vld [vmem:[#allocation5 + $0x128] sm:$0xff]  ;;  %v818_v22 = vpack.c.bf16 %v211_v19, %v209_v18  ;;  %v213_v24 = vld [vmem:[#allocation5 + $0xf8] sm:$0xff]  ;;  %v222_v33 = vsub.s32 0, %v1074_v32  ;;  %vm524_vm6 = vcmask 261120  }
  0xb5   : > { %813 = vmatprep.subr.bf16.mxu0 %v812_v11  ;;  %v820_v23 = vpack.c.bf16 %v216_v21, %v214_v20  ;;  %v215_v25 = vld [vmem:[#allocation5 + $0x120] sm:$0xff]  ;;  %v1077_v34 = vld [vmem:[#allocation5 + $0x148] ss:$8 sm:$0x3]  ;;  %v320_v45 = vld [vmem:[%s1173_s2 + $0x18] sm:$0xff]  ;;  %vm597_vm7 = vcmask 516096  }
  0xb6   : > { %s187_s0 = sshra.s32 %s1063_s19, 3  ;;  %s190_s21 = sand.u32 7, %s1063_s19  ;;  %v822_v28 = vpack.c.bf16 %v215_v25, %v213_v24  ;;  %v223_v35 = vrot.slane %v1077_v34, %v222_v33  ;;  %v317_v40 = vld [vmem:[%s1173_s2] sm:$0xff]  ;;  %v318_v41 = vld [vmem:[%s1173_s2 + $0x8] sm:$0xff]  ;;  %v319_v42 = vld [vmem:[%s1173_s2 + $0x10] sm:$0xff]  ;;  %vm615_vm8 = vcmask 785408  }
  0xb7   : > { %s705_s22 = smul.u32 40, %s187_s0  ;;  %v825_v44 = vpack.c.bf16 %v318_v41, %v317_v40  ;;  %v828_v46 = vpack.c.bf16 %v320_v45, %v319_v42  ;;  %v321_v47 = vld [vmem:[%s1173_s2 + $0x20] sm:$0xff]  ;;  %v322_v48 = vld [vmem:[%s1173_s2 + $0x28] sm:$0xff]  ;;  %v323_v50 = vld [vmem:[%s1173_s2 + $0x30] sm:$0xff]  ;;  %vm637_vm9 = vcmp.lt.s32.totalorder %v220_v31, 256 }
  0xb8   : > { %815 = vmatpush1.bf16.msra.mxu0 %v814_v16  ;;  %v831_v49 = vpack.c.bf16 %v322_v48, %v321_v47  ;;  %v324_v51 = vld [vmem:[%s1173_s2 + $0x38] sm:$0xff]  ;;  %v325_v53 = vld [vmem:[%s1173_s2 + $0x40] sm:$0xff]  ;;  %v326_v54 = vld [vmem:[%s1173_s2 + $0x48] sm:$0xff] }
  0xb9   : > { %817 = vmatprep.subr.bf16.mxu0 %v816_v17  ;;  %s193_s23 = sadd.s32 %s705_s22, %s190_s21  ;;  %826 = vmatpush3.bf16.msra.mxu1 %v825_v44  ;;  %v834_v52 = vpack.c.bf16 %v324_v51, %v323_v50  ;;  %v837_v55 = vpack.c.bf16 %v326_v54, %v325_v53  ;;  %v327_v61 = vld [vmem:[%s1173_s2 + $0x50] sm:$0xff]  ;;  %v328_v62 = vld [vmem:[%s1173_s2 + $0x58] sm:$0xff]  ;;  %v329_v0 = vld [vmem:[%s1173_s2 + $0x60] sm:$0xff] }
  0xba   : > { %s194_s24 = scalar_lea.vmem [#allocation5], %s193_s23  ;;  %827 = vmatprep.subr.bf16.mxu1 %v970_v43  ;;  %v840_v63 = vpack.c.bf16 %v328_v62, %v327_v61  ;;  %v330_v1 = vld [vmem:[%s1173_s2 + $0x68] sm:$0xff]  ;;  %v331_v3 = vld [vmem:[%s1173_s2 + $0x70] sm:$0xff]  ;;  %v332_v4 = vld [vmem:[%s1173_s2 + $0x78] sm:$0xff] }
  0xbb   : > { %v195_v26 = vld [vmem:[%s194_s24] ss:$8 sm:$0xf]  ;;  %v843_v2 = vpack.c.bf16 %v330_v1, %v329_v0  ;;  %v846_v5 = vpack.c.bf16 %v332_v4, %v331_v3  ;;  %v415_v33 = vld [vmem:[#allocation5 + $0x158] ss:$0 sm:$0xff] }
  0xbc   : > { %v196_v27 = vld [vmem:[%s194_s24] ss:$8 sm:$0x10]  ;;  %819 = vmatpush1.bf16.msra.mxu0 %v818_v22  ;;  %v408_v7 = vld [vmem:[#allocation5 + $0x40] sm:$0xff]  ;;  %v409_v13 = vld [vmem:[#allocation5 + $0x68] sm:$0xff]  ;;  %v226_v22 = vsub.s32 1, %v1074_v32 }
  0xbd   : > { %v197_v29 = vor.u32 %v196_v27, %v195_v26  ;;  %821 = vmatprep.subr.bf16.mxu0 %v820_v23  ;;  %829 = vmatpush3.bf16.msra.mxu1 %v828_v46  ;;  %v407_v6 = vld [vmem:[#allocation5 + $0x18] sm:$0xff]  ;;  %v410_v14 = vld [vmem:[#allocation5 + $0x90] sm:$0xff]  ;;  %v412_v17 = vld [vmem:[#allocation5 + $0xe0] sm:$0xff]  ;;  %v975_v3 = vmov 1966171168  }
  0xbe   : > { %830 = vmatprep.subr.bf16.mxu1 %v970_v43  ;;  %v849_v8 = vpack.c.bf16 %v408_v7, %v407_v6  ;;  %v852_v15 = vpack.c.bf16 %v410_v14, %v409_v13  ;;  %v411_v16 = vld [vmem:[#allocation5 + $0xb8] sm:$0xff]  ;;  %v413_v19 = vld [vmem:[#allocation5 + $0x108] sm:$0xff]  ;;  %v414_v20 = vld [vmem:[#allocation5 + $0x130] sm:$0xff]  ;;  %v227_v23 = vrot.slane %v1077_v34, %v226_v22  ;;  %v621_v4 = vunpack.c.l.s4 %v975_v3 }
  0xbf   : > { %199 = vst.msk [vmem:[#allocation2] sm:$0x1] %vm198_vm1, %v197_v29  ;;  %v855_v18 = vpack.c.bf16 %v412_v17, %v411_v16  ;;  %v858_v21 = vpack.c.bf16 %v414_v20, %v413_v19  ;;  %v517_v46 = vld [vmem:[#allocation5 + $0x48] sm:$0xff]  ;;  %v518_v47 = vld [vmem:[#allocation5 + $0x70] sm:$0xff] }
  0xc0   : > { %823 = vmatpush1.bf16.msra.mxu0 %v822_v28  ;;  %v622_v7 = vunpack.c.0.s8 %v621_v4 }
  0xc1   : > { %848 = vmatprep.subr.bf16.mxu0 %v970_v43  ;;  %832 = vmatpush3.bf16.msra.mxu1 %v831_v49  ;;  %v519_v49 = vld [vmem:[#allocation5 + $0x98] sm:$0xff] }
  0xc2   : > { %833 = vmatprep.subr.bf16.mxu1 %v970_v43  ;;  %v864_v50 = vpack.c.bf16 %v519_v49, %v518_v47  ;;  %v625_v13 = vsub.s32 %v622_v7, %v1074_v32 }
  0xc5   : > { %835 = vmatpush3.bf16.msra.mxu1 %v834_v52 }
  0xc6   : > { %v1069_v30 = vld [vmem:[#allocation2] sm:$0x1]  ;;  %836 = vmatprep.subr.bf16.mxu1 %v970_v43 }
  0xc7   : > { %706 = vmatmul.mubr.msk.f32.vlgmr.msra.gmra.mrb[0].mxu0 %vm230_vm2, %v1069_v30 }
  0xc8   : > { %794 = vmatprep.mubr.msk.f32.mxu0 %vm971_vm4, %v969_v9  ;;  %850 = vmatpush3.bf16.msra.mxu0 %v849_v8 }
  0xc9   : > { %838 = vmatpush3.bf16.msra.mxu1 %v837_v55  ;;  %851 = vmatprep.subr.bf16.mxu0 %v970_v43 }
  0xca   : > { %839 = vmatprep.subr.bf16.mxu1 %v970_v43 }
  0xcc   : > { %853 = vmatpush3.bf16.msra.mxu0 %v852_v15 }
  0xcd   : > { %841 = vmatpush3.bf16.msra.mxu1 %v840_v63  ;;  %854 = vmatprep.subr.bf16.mxu0 %v970_v43 }
  0xce   : > { %842 = vmatprep.subr.bf16.mxu1 %v970_v43 }
  0xd0   : > { %856 = vmatpush3.bf16.msra.mxu0 %v855_v18 }
  0xd1   : > { %844 = vmatpush3.bf16.msra.mxu1 %v843_v2  ;;  %857 = vmatprep.subr.bf16.mxu0 %v970_v43 }
  0xd2   : > { %845 = vmatprep.subr.bf16.mxu1 %v970_v43 }
  0xd4   : > { %859 = vmatpush3.bf16.msra.mxu0 %v858_v21 }
  0xd5   : > { %847 = vmatpush3.bf16.msra.mxu1 %v846_v5  ;;  %860 = vmatprep.subr.bf16.mxu0 %v970_v43 }
 0x19a   : > { %v300_v36 = vpop.f32.mrb[0].mxu0 }
 0x19b   : > { %v301_v37 = vadd.f32 %v300_v36, %v223_v35  ;;  %v1080_v38 = vpop.f32.mrb[1].mxu0 }
 0x19c   : > { %v303_v24 = vadd.f32 %v1080_v38, %v227_v23 }
 0x19d   : > { %v306_v39 = vsel %vm305_vm3, %v301_v37, -inf }
 0x19e   : > { %307 = vmax.xlane.f32.xlu0 %v306_v39 }
 0x22b   : > { %v308_v56 = vpop.xlane.xlu0 %307 }
 0x22c   : > { %v309_v57 = vsub.f32 %v301_v37, %v308_v56 }
 0x22e   : > { %v310_v58 = vmul.f32 1.442695, %v309_v57 }
 0x230   : > { %896 = vpow2.f32 %v310_v58  ;;  %v520_v58 = vld [vmem:[#allocation5 + $0x160] ss:$0 sm:$0xff] }
 0x23a   : > { %v897_v59 = vpop.eup %896 }
 0x23b   : > { %v312_v60 = vsel %vm305_vm3, %v897_v59, 0.0 }
 0x23c   : > { %313 = vadd.xlane.f32.xlu0 %v312_v60 }
 0x2c9   : > { %v314_v10 = vpop.xlane.xlu0 %313 }
 0x2ca   : > { %898 = vrcp.f32 %v314_v10 }
 0x2d4   : > { %v899_v11 = vpop.eup %898 }
 0x2d5   : > { %v1146_v12 = vmul.f32 %v899_v11, %v897_v59 }
 0x2d7   : > { %776 = vmatmul.mubr.f32.vlgmr.msra.gmra.mrb[0].mxu1 %v1146_v12 }
 0x3aa   : > { %v399_v25 = vpop.f32.mrb[0].mxu1 }
 0x3ab   : > { %v403_v26 = vadd.f32 %v399_v25, %v303_v24  ;;  %v777_v27 = vpop.f32.mrb[1].mxu1 }
 0x3ad   : > { %v404_v28 = vmax.f32 %v403_v26, 0.0 }
 0x3af   : > { %405 = vst.msk [vmem:[#allocation2] sm:$0x1] %vm198_vm1, %v404_v28 }
 0x3b6   : > { %v406_v29 = vld [vmem:[#allocation2] sm:$0x1] }
 0x3b7   : > { %795 = vmatmul.mubr.msk.f32.vlgmr.msra.gmra.mrb[2].mxu0 %vm230_vm2, %v406_v29 }
 0x3b8   : > { %805 = vmatprep.mubr.msk.f32.mxu0 %vm971_vm4, %v969_v9  ;;  %v516_v9 = vld [vmem:[#allocation5 + $0x20] sm:$0xff] }
 0x3b9   : > { %v861_v48 = vpack.c.bf16 %v517_v46, %v516_v9 }
 0x3bb   : > { %862 = vmatpush3.bf16.msra.mxu0 %v861_v48 }
 0x3bc   : > { %863 = vmatprep.subr.bf16.mxu0 %v970_v43 }
 0x3bf   : > { %865 = vmatpush3.bf16.msra.mxu0 %v864_v50 }
 0x48a   : > { %v485_v35 = vpop.f32.mrb[2].mxu0 }
 0x48b   : > { %v486_v36 = vadd.f32 %v485_v35, %v415_v33  ;;  %v796_v37 = vpop.f32.mrb[3].mxu0 }
 0x48d   : > { %496 = vrot.lane.b32.xlu1 %v486_v36, %s972_s6  ;;  %v708_v34 = vmul.f32 -1.442695, %v486_v36 }
 0x48f   : > { %900 = vpow2.f32 %v708_v34 }
 0x499   : > { %v901_v38 = vpop.eup %900 }
 0x49a   : > { %v492_v39 = vadd.f32 1.0, %v901_v38 }
 0x49c   : > { %902 = vrcp.f32 %v492_v39 }
 0x4a6   : > { %v903_v40 = vpop.eup %902 }
 0x4a7   : > { %v506_v52 = vsub.f32 1.0, %v903_v40  ;;  %v512_v54 = vmul.f32 %v903_v40, %v1069_v30 }
 0x4ff   : > { %v497_v41 = vpop.permute.xlu1 %496 }
 0x500   : > { %v499_v42 = vmul.f32 %v903_v40, %v497_v41 }
 0x502   : > { %501 = vrot.lane.b32.xlu1 %v499_v42, %s973_s7 }
 0x574   : > { %v502_v44 = vpop.permute.xlu1 %501 }
 0x575   : > { %v504_v45 = vadd.f32 %v502_v44, %v486_v36 }
 0x577   : > { %904 = vtanh.f32 %v504_v45 }
 0x581   : > { %v905_v51 = vpop.eup %904 }
 0x582   : > { %508 = vrot.lane.b32.xlu0 %v905_v51, %s974_s8 }
 0x5f4   : > { %v509_v53 = vpop.permute.xlu0 %508 }
 0x5f5   : > { %v511_v55 = vmul.f32 %v509_v53, %v506_v52 }
 0x5f7   : > { %v513_v56 = vadd.f32 %v512_v54, %v511_v55 }
 0x5f9   : > { %515 = vst.msk [vmem:[#allocation2] sm:$0x1] %vm514_vm5, %v513_v56  ;;  %522 = vrot.lane.b32.xlu1 %v513_v56, %s974_s8 }
 0x66b   : > { %v523_v57 = vpop.permute.xlu1 %522 }
 0x66c   : > { %806 = vmatmul.mubr.msk.f32.vlgmr.msra.gmra.mrb[4].mxu0 %vm524_vm6, %v523_v57 }
 0x73f   : > { %v593_v59 = vpop.f32.mrb[4].mxu0 }
 0x740   : > { %v594_v43 = vadd.f32 %v593_v59, %v520_v58  ;;  %v807_v60 = vpop.f32.mrb[5].mxu0 }
 0x742   : > { %v598_v61 = vsel %vm597_vm7, %v594_v43, -inf }
 0x743   : > { %599 = vmax.xlane.f32.xlu1 %v598_v61 }
 0x754   : > { %611 = vrot.lane.b32.xlu1 %v513_v56, %s972_s6 }
 0x7d0   : > { %v600_v62 = vpop.xlane.xlu1 %599 }
 0x7d1   : > { %v601_v63 = vsub.f32 %v594_v43, %v600_v62 }
 0x7d3   : > { %v602_v30 = vmul.f32 1.442695, %v601_v63 }
 0x7d4   : > { %v612_v11 = vpop.permute.xlu1 %611 }
 0x7d5   : > { %906 = vpow2.f32 %v602_v30 }
 0x7df   : > { %v907_v0 = vpop.eup %906 }
 0x7e0   : > { %v604_v1 = vsel %vm597_vm7, %v907_v0, 0.0 }
 0x7e1   : > { %605 = vadd.xlane.f32.xlu0 %v604_v1 }
 0x86e   : > { %v606_v2 = vpop.xlane.xlu0 %605 }
 0x86f   : > { %908 = vlog2.f32 %v606_v2 }
 0x879   : > { %v909_v5 = vpop.eup %908 }
 0x87a   : > { %v608_v6 = vmul.f32 0.6931472, %v909_v5 }
 0x87c   : > { %v609_v8 = vadd.f32 %v608_v6, %v600_v62 }
 0x87e   : > { %v610_v10 = vsub.f32 %v594_v43, %v609_v8 }
 0x880   : > { %v614_v14 = vsel %vm230_vm2, %v610_v10, %v612_v11 }
 0x881   : > { %v616_v15 = vsel %vm615_vm8, %v614_v14, 0.0 }
 0x882   : > { %v619_v16 = vcombine.low %v616_v15, %v1146_v12 }
 0x884   : > { %v626_v17 = vrot.slane %v619_v16, %v625_v13 }
 0x886   : > { %v633_v18 = vrot.slane %v626_v17, %v625_v13 }
 0x888   : > { %639 = vst.msk [vmem:[%s1055_s15] sm:$0x3] %vm637_vm9, %v633_v18 }
 0x889 PF: > { %s21_s20 = sadd.s32 1, %s962_s20  }
 0x88a   : > { %p18_p9 = scmp.ge.s32.totalorder %s21_s20, 8  }
 0x88c   :  { %20 = sbr.rel (!%p18_p9) target bundleno = 16 (0x10), region = 70 }
 0x893   :  { %659 = vsyncpa [#allocation6], 1 }
 0x894   :  { %661 = vsyncpa [#allocation6 + $0x1], 1 }

</bundles_post_ra>
